<compile_context>
chip_gen: v5e
topology: v5e:2x2
jax: 0.10.0
libtpu: 0.0.40
codegen_flags: <defaults>
</compile_context>

<pallas_src>
import functools

import jax
import jax.numpy as jnp
from jax import lax
from jax.experimental import pallas as pl
from jax.experimental.pallas import tpu as pltpu

LANES = 128
SUBLANES = 8
ALIGN_ELEMS = SUBLANES * LANES          # 1024: elements per (8,128) f32 vreg
MAX_TILE_ROWS = 8192                    # up to 4 MiB / input / grid step (f32)
NUM_CORE_SPLIT = 2                      # v7x has 2 TensorCores per chip


def _pick_tiling(x_itemsize, t_itemsize, rows8, max_tile_rows=None):
    """Rows-per-grid-step and an explicit scoped-VMEM limit for this chip."""
    try:
        vmem_cap = int(pltpu.get_tpu_info().vmem_capacity_bytes)
    except Exception:                    # info query unavailable -> be safe
        vmem_cap = 64 << 20              # v7x per-TensorCore VMEM (smallest)
    # The double-buffered input stream gets at most ~half of physical VMEM
    # (diminishing returns past ~4 MiB per input per step: 0.35 us/step grid
    # overhead is already <10% there, even at v7x HBM speed).
    stream_budget = min(vmem_cap // 2, 32 << 20)
    per_row = 2 * LANES * (x_itemsize + t_itemsize)   # bytes/row, double-buffered
    cap_rows = MAX_TILE_ROWS if max_tile_rows is None else max_tile_rows
    tile_rows = min(stream_budget // per_row, cap_rows)
    # Row alignment so the block satisfies the native tiling of the narrowest
    # dtype: (8,128) f32, (16,128) bf16, (32,128) int8.
    align = max(8, 32 // x_itemsize, 32 // t_itemsize)
    tile_rows = max((tile_rows // align) * align, align)
    tile_rows = min(tile_rows, rows8)    # == full array rows for small inputs
    vmem_limit = int(min(per_row * tile_rows + (24 << 20), vmem_cap - (8 << 20)))
    return tile_rows, vmem_limit


def _recall_loss_kernel(x_ref, t_ref, tp_ref, s_ref, *, in_sigmoid, tile_rows,
                        blocks_per_core, num_blocks, grid_blocks, last_rows):
    c = pl.program_id(0)                 # core-split axis ("parallel")
    i = pl.program_id(1)                 # streaming axis ("arbitrary")
    g = c * blocks_per_core + i          # global block index

    @pl.when(i == 0)
    def _init():                         # per-core accumulators live in the output
        tp_ref[...] = jnp.zeros_like(tp_ref)
        s_ref[...] = jnp.zeros_like(s_ref)

    def accum(valid_rows):
        x = x_ref[...].astype(jnp.float32)
        t = t_ref[...].astype(jnp.float32)
        if in_sigmoid:
            x = jax.nn.sigmoid(x)
        xt = x * t
        if valid_rows is not None:
            # Ragged final block: rows >= valid_rows hold unspecified data.
            rows = lax.broadcasted_iota(jnp.int32, (tile_rows, LANES), 0)
            keep = rows < valid_rows
            xt = jnp.where(keep, xt, 0.0)
            x = jnp.where(keep, x, 0.0)
        # Sublane-aligned vreg adds: reduce (tile_rows,128) -> (8,128), then a
        # single elementwise accumulate into the resident output block.
        ng = tile_rows // SUBLANES
        tp_ref[...] += xt.reshape(ng, SUBLANES, LANES).sum(axis=0)
        s_ref[...] += x.reshape(ng, SUBLANES, LANES).sum(axis=0)

    if last_rows != tile_rows:           # a ragged final block exists
        if num_blocks > 1:
            @pl.when(g < num_blocks - 1)
            def _full():
                accum(None)              # hot path: no masks at all

        @pl.when(g == num_blocks - 1)
        def _ragged():
            accum(last_rows)             # mask only on the final block
    elif grid_blocks > num_blocks:       # padded steps from the core split
        @pl.when(g < num_blocks)
        def _guarded():
            accum(None)
    else:
        accum(None)


def recall_loss(inputs, targets, in_sigmoid: bool = False, *, max_tile_rows=None):
    """Pallas TPU implementation of RecallLoss.forward. Returns an f32 scalar."""
    x = jnp.reshape(inputs, (-1,))
    t = jnp.reshape(targets, (-1,))
    # dtype normalization: keep HBM bytes minimal; all math is f32 in-kernel.
    if not jnp.issubdtype(x.dtype, jnp.floating) or x.dtype == jnp.float64:
        x = x.astype(jnp.float32)
    if jnp.issubdtype(t.dtype, jnp.floating):
        if t.dtype == jnp.float64:
            t = t.astype(jnp.float32)
    else:
        # Exact for 0/1 (bool/int) labels; 1 B/elem of HBM traffic.
        t = t.astype(jnp.int8)

    n = x.shape[0]
    n_main = (n // ALIGN_ELEMS) * ALIGN_ELEMS
    rem = n - n_main

    tp = jnp.float32(0.0)
    s = jnp.float32(0.0)

    if n_main:
        rows8 = n_main // LANES          # multiple of 8 by construction
        if rem:
            # TODO(synk): this prefix slice materializes a copy in XLA.
            xm = lax.slice(x, (0,), (n_main,)).reshape(rows8, LANES)
            tm = lax.slice(t, (0,), (n_main,)).reshape(rows8, LANES)
        else:
            xm = x.reshape(rows8, LANES)  # pure bitcast, no copy
            tm = t.reshape(rows8, LANES)

        tile_rows, vmem_limit = _pick_tiling(
            xm.dtype.itemsize, tm.dtype.itemsize, rows8, max_tile_rows)
        num_blocks = -(-rows8 // tile_rows)
        last_rows = rows8 - (num_blocks - 1) * tile_rows
        # Shard the stream across both TensorCores (v7x) once there is enough
        # work; a "parallel" axis of 2 just runs sequentially on 1-TC chips.
        ncore = NUM_CORE_SPLIT if num_blocks >= 8 else 1
        bpc = -(-num_blocks // ncore)
        grid_blocks = ncore * bpc

        kernel = functools.partial(
            _recall_loss_kernel, in_sigmoid=in_sigmoid, tile_rows=tile_rows,
            blocks_per_core=bpc, num_blocks=num_blocks,
            grid_blocks=grid_blocks, last_rows=last_rows)

        def in_map(c, i):
            # Clamp padded core-split steps to a valid block; the kernel skips
            # their contribution with pl.when.
            return (jnp.minimum(c * bpc + i, num_blocks - 1), 0)

        in_spec = pl.BlockSpec((tile_rows, LANES), in_map)
        out_spec = pl.BlockSpec((pl.Squeezed(), SUBLANES, LANES),
                                lambda c, i: (c, 0, 0))

        cost = pl.CostEstimate(
            flops=3 * n_main,
            transcendentals=n_main if in_sigmoid else 0,
            bytes_accessed=(xm.size * xm.dtype.itemsize
                            + tm.size * tm.dtype.itemsize
                            + 2 * ncore * SUBLANES * LANES * 4))

        tp_part, s_part = pl.pallas_call(
            kernel,
            out_shape=(jax.ShapeDtypeStruct((ncore, SUBLANES, LANES), jnp.float32),
                       jax.ShapeDtypeStruct((ncore, SUBLANES, LANES), jnp.float32)),
            grid_spec=pltpu.PrefetchScalarGridSpec(
                num_scalar_prefetch=0,
                grid=(ncore, bpc),
                in_specs=[in_spec, in_spec],
                out_specs=[out_spec, out_spec],
            ),
            compiler_params=pltpu.CompilerParams(
                dimension_semantics=("parallel", "arbitrary"),
                vmem_limit_bytes=vmem_limit,
            ),
            cost_estimate=cost,
        )(xm, tm)
        tp = tp + jnp.sum(tp_part)
        s = s + jnp.sum(s_part)

    if rem:
        # Sub-1024-element tail: plain jnp reduction (fuses with the tail slice
        # under jit; negligible either way).
        xr = x[n_main:].astype(jnp.float32)
        tr = t[n_main:].astype(jnp.float32)
        if in_sigmoid:
            xr = jax.nn.sigmoid(xr)
        tp = tp + jnp.sum(xr * tr)
        s = s + jnp.sum(xr)

    # Recall = TP / (TP + FN) with FN = sum(x*(1-t)), so TP + FN == sum(x).
    # No smoothing term, exactly as in the reference module.
    return 1.0 - tp / s


def _recall_loss_ref(inputs, targets, in_sigmoid: bool = False):
    x = jnp.reshape(inputs, (-1,)).astype(jnp.float32)
    t = jnp.reshape(targets, (-1,)).astype(jnp.float32)
    if in_sigmoid:
        x = jax.nn.sigmoid(x)
    TP = jnp.sum(x * t)
    FN = jnp.sum(x * (1.0 - t))
    return 1.0 - TP / (TP + FN)


if __name__ == "__main__":
    key = jax.random.PRNGKey(0)
    ks = jax.random.split(key, 8)

    def check(loss, ref, name):
        assert jnp.allclose(loss, ref, rtol=1e-5, atol=1e-6), (name, loss, ref)

    # 1/2: NCHW conv-head style input, fully aligned (n = 2048).
    B, C, H, W = 2, 4, 16, 16
    logits = jax.random.normal(ks[0], (B, C, H, W), dtype=jnp.float32)
    probs = jax.nn.sigmoid(logits)
    targets = (jax.random.uniform(ks[1], (B, C, H, W)) > 0.5).astype(jnp.float32)

    loss = recall_loss(probs, targets, in_sigmoid=False)
    jax.block_until_ready(loss)
    check(loss, _recall_loss_ref(probs, targets, False), "aligned/no-sigmoid")

    loss = recall_loss(logits, targets, in_sigmoid=True)
    jax.block_until_ready(loss)
    check(loss, _recall_loss_ref(logits, targets, True), "aligned/sigmoid")

    # 3: misaligned n (7326): kernel on the 1024-aligned prefix + jnp tail.
    x3 = jax.random.normal(ks[2], (2, 3, 33, 37), dtype=jnp.float32)
    t3 = (jax.random.uniform(ks[3], (2, 3, 33, 37)) > 0.5).astype(jnp.float32)
    loss = recall_loss(x3, t3, in_sigmoid=True)
    jax.block_until_ready(loss)
    check(loss, _recall_loss_ref(x3, t3, True), "misaligned tail")

    # 4: integer targets -> int8 HBM stream (aligned, n = 8192).
    x4 = jax.random.normal(ks[4], (2, 4, 32, 32), dtype=jnp.float32)
    t4 = (jax.random.uniform(ks[5], (2, 4, 32, 32)) > 0.5).astype(jnp.int32)
    loss = recall_loss(x4, t4, in_sigmoid=True)
    jax.block_until_ready(loss)
    check(loss, _recall_loss_ref(x4, t4, True), "int8 targets")

    # 5: forced small tile -> ragged last grid block (mask only on that block).
    x5 = jax.random.normal(ks[6], (2, 4, 40, 32), dtype=jnp.float32)
    t5 = (jax.random.uniform(ks[7], (2, 4, 40, 32)) > 0.5).astype(jnp.float32)
    loss = recall_loss(x5, t5, in_sigmoid=True, max_tile_rows=32)
    jax.block_until_ready(loss)
    check(loss, _recall_loss_ref(x5, t5, True), "ragged block")

    # 6: forced tiny tile -> 11 blocks -> 2-way "parallel" core split with a
    #    padded grid step (clamped index_map + pl.when skip).
    x6 = jax.random.normal(ks[0], (2, 4, 44, 32), dtype=jnp.float32)
    t6 = (jax.random.uniform(ks[1], (2, 4, 44, 32)) > 0.5).astype(jnp.float32)
    loss = recall_loss(x6, t6, in_sigmoid=True, max_tile_rows=8)
    jax.block_until_ready(loss)
    check(loss, _recall_loss_ref(x6, t6, True), "core split")

    print("KERNEL_OK")
</pallas_src>

<mosaic_0001>
module attributes {stable_mosaic.version = 11 : i64} {
  func.func @_recall_loss_kernel(%arg0: i32, %arg1: i32, %arg2: memref<16x128xf32, #tpu.memory_space<vmem>>, %arg3: memref<16x128xf32, #tpu.memory_space<vmem>>, %arg4: memref<1x8x128xf32, #tpu.memory_space<vmem>>, %arg5: memref<1x8x128xf32, #tpu.memory_space<vmem>>) attributes {dimension_semantics = [#tpu.dimension_semantics<parallel>, #tpu.dimension_semantics<arbitrary>], iteration_bounds = array<i64: 1, 1>, scalar_prefetch = 0 : i64, scratch_operands = 0 : i64, tpu.core_type = #tpu.core_type<tc>, window_params = [{transform_indices = @transform_0, window_bounds = array<i64: 16, 128>}, {transform_indices = @transform_1, window_bounds = array<i64: 16, 128>}, {transform_indices = @transform_2, window_bounds = array<i64: 1, 8, 128>}, {transform_indices = @transform_3, window_bounds = array<i64: 1, 8, 128>}]} {
    %c0_i32 = arith.constant 0 : i32
    %0 = arith.cmpi eq, %arg1, %c0_i32 : i32
    %1 = arith.extui %0 : i1 to i32
    %c0_i32_0 = arith.constant 0 : i32
    %2 = arith.cmpi ne, %1, %c0_i32_0 : i32
    scf.if %2 {
      %cst_17 = arith.constant 0.000000e+00 : f32
      %22 = vector.broadcast %cst_17 : f32 to vector<8x128xf32>
      %c0_18 = arith.constant 0 : index
      %c0_19 = arith.constant 0 : index
      %c0_20 = arith.constant 0 : index
      %23 = vector.load %arg4[%c0_18, %c0_19, %c0_20] : memref<1x8x128xf32, #tpu.memory_space<vmem>>, vector<1x8x128xf32>
      %24 = vector.shape_cast %23 : vector<1x8x128xf32> to vector<8x128xf32>
      %25 = vector.shape_cast %22 : vector<8x128xf32> to vector<1x8x128xf32>
      tpu.vector_store %arg4[%c0_18, %c0_19, %c0_20], %25 {strides = array<i32>} : memref<1x8x128xf32, #tpu.memory_space<vmem>>, vector<1x8x128xf32>,
      %cst_21 = arith.constant 0.000000e+00 : f32
      %26 = vector.broadcast %cst_21 : f32 to vector<8x128xf32>
      %c0_22 = arith.constant 0 : index
      %c0_23 = arith.constant 0 : index
      %c0_24 = arith.constant 0 : index
      %27 = vector.load %arg5[%c0_22, %c0_23, %c0_24] : memref<1x8x128xf32, #tpu.memory_space<vmem>>, vector<1x8x128xf32>
      %28 = vector.shape_cast %27 : vector<1x8x128xf32> to vector<8x128xf32>
      %29 = vector.shape_cast %26 : vector<8x128xf32> to vector<1x8x128xf32>
      tpu.vector_store %arg5[%c0_22, %c0_23, %c0_24], %29 {strides = array<i32>} : memref<1x8x128xf32, #tpu.memory_space<vmem>>, vector<1x8x128xf32>,
    } else {
    }
    %c0 = arith.constant 0 : index
    %c0_1 = arith.constant 0 : index
    %3 = vector.load %arg2[%c0, %c0_1] : memref<16x128xf32, #tpu.memory_space<vmem>>, vector<16x128xf32>
    %c0_2 = arith.constant 0 : index
    %c0_3 = arith.constant 0 : index
    %4 = vector.load %arg3[%c0_2, %c0_3] : memref<16x128xf32, #tpu.memory_space<vmem>>, vector<16x128xf32>
    %5 = arith.mulf %3, %4 : vector<16x128xf32>
    %c0_4 = arith.constant 0 : index
    %c0_5 = arith.constant 0 : index
    %c0_6 = arith.constant 0 : index
    %6 = vector.load %arg4[%c0_4, %c0_5, %c0_6] : memref<1x8x128xf32, #tpu.memory_space<vmem>>, vector<1x8x128xf32>
    %7 = vector.shape_cast %6 : vector<1x8x128xf32> to vector<8x128xf32>
    %8 = vector.shape_cast %5 : vector<16x128xf32> to vector<2x8x128xf32>
    %cst = arith.constant dense<0.000000e+00> : vector<8x128xf32>
    %9 = vector.multi_reduction <add>, %8, %cst [0] : vector<2x8x128xf32> to vector<8x128xf32>
    %10 = arith.addf %7, %9 : vector<8x128xf32>
    %c0_7 = arith.constant 0 : index
    %c0_8 = arith.constant 0 : index
    %c0_9 = arith.constant 0 : index
    %11 = vector.load %arg4[%c0_7, %c0_8, %c0_9] : memref<1x8x128xf32, #tpu.memory_space<vmem>>, vector<1x8x128xf32>
    %12 = vector.shape_cast %11 : vector<1x8x128xf32> to vector<8x128xf32>
    %13 = vector.shape_cast %10 : vector<8x128xf32> to vector<1x8x128xf32>
    tpu.vector_store %arg4[%c0_7, %c0_8, %c0_9], %13 {strides = array<i32>} : memref<1x8x128xf32, #tpu.memory_space<vmem>>, vector<1x8x128xf32>,
    %c0_10 = arith.constant 0 : index
    %c0_11 = arith.constant 0 : index
    %c0_12 = arith.constant 0 : index
    %14 = vector.load %arg5[%c0_10, %c0_11, %c0_12] : memref<1x8x128xf32, #tpu.memory_space<vmem>>, vector<1x8x128xf32>
    %15 = vector.shape_cast %14 : vector<1x8x128xf32> to vector<8x128xf32>
    %16 = vector.shape_cast %3 : vector<16x128xf32> to vector<2x8x128xf32>
    %cst_13 = arith.constant dense<0.000000e+00> : vector<8x128xf32>
    %17 = vector.multi_reduction <add>, %16, %cst_13 [0] : vector<2x8x128xf32> to vector<8x128xf32>
    %18 = arith.addf %15, %17 : vector<8x128xf32>
    %c0_14 = arith.constant 0 : index
    %c0_15 = arith.constant 0 : index
    %c0_16 = arith.constant 0 : index
    %19 = vector.load %arg5[%c0_14, %c0_15, %c0_16] : memref<1x8x128xf32, #tpu.memory_space<vmem>>, vector<1x8x128xf32>
    %20 = vector.shape_cast %19 : vector<1x8x128xf32> to vector<8x128xf32>
    %21 = vector.shape_cast %18 : vector<8x128xf32> to vector<1x8x128xf32>
    tpu.vector_store %arg5[%c0_14, %c0_15, %c0_16], %21 {strides = array<i32>} : memref<1x8x128xf32, #tpu.memory_space<vmem>>, vector<1x8x128xf32>,
    return
  }
  func.func @transform_0(%arg0: i32, %arg1: i32) -> (i32, i32) {
    %c1_i32 = arith.constant 1 : i32
    %0 = arith.muli %arg0, %c1_i32 : i32
    %1 = arith.addi %0, %arg1 : i32
    %c0_i32 = arith.constant 0 : i32
    %2 = arith.minsi %1, %c0_i32 : i32
    %c0_i32_0 = arith.constant 0 : i32
    %c0_i32_1 = arith.constant 0 : i32
    return %2, %c0_i32_0 : i32, i32
  }
  func.func @transform_1(%arg0: i32, %arg1: i32) -> (i32, i32) {
    %c1_i32 = arith.constant 1 : i32
    %0 = arith.muli %arg0, %c1_i32 : i32
    %1 = arith.addi %0, %arg1 : i32
    %c0_i32 = arith.constant 0 : i32
    %2 = arith.minsi %1, %c0_i32 : i32
    %c0_i32_0 = arith.constant 0 : i32
    %c0_i32_1 = arith.constant 0 : i32
    return %2, %c0_i32_0 : i32, i32
  }
  func.func @transform_2(%arg0: i32, %arg1: i32) -> (i32, i32, i32) {
    %c0_i32 = arith.constant 0 : i32
    %c0_i32_0 = arith.constant 0 : i32
    %c0_i32_1 = arith.constant 0 : i32
    return %arg0, %c0_i32, %c0_i32_0 : i32, i32, i32
  }
  func.func @transform_3(%arg0: i32, %arg1: i32) -> (i32, i32, i32) {
    %c0_i32 = arith.constant 0 : i32
    %c0_i32_0 = arith.constant 0 : i32
    %c0_i32_1 = arith.constant 0 : i32
    return %arg0, %c0_i32, %c0_i32_0 : i32, i32, i32
  }
}

</mosaic_0001>

<bundles_post_ra>
// kernel: tpu_custom_call.1
= control target key start
LH: loop header
LB: loop body
LE: loop exit
PB: predicated region body
PF: predicated region fallthrough
CT: control target
= control target key end

     0   :  { %9 = vsyncpa [#allocation3], 0  ;;  %s274_s0 = inlined_call_operand.hbm [shape: f32[16,128], index: 0, kind: input, shape index: {}]   ;;  %s275_s1 = inlined_call_operand.hbm [shape: f32[16,128], index: 1, kind: input, shape index: {}]   ;;  %s276_s2 = inlined_call_operand.hbm [shape: f32[1,8,128], index: 2, kind: output, shape index: {0}]   ;;  %s277_s3 = inlined_call_operand.hbm [shape: f32[1,8,128], index: 3, kind: output, shape index: {1}]  }
   0x1   :  { %10 = vsyncpa [#allocation6], 0 }
   0x2   :  { %11 = vsyncpa [#allocation4], 0 }
   0x3   :  { %12 = vsyncpa [#allocation9], 0  ;;  %s23_s14 = sshll.u32 %s274_s0, 4  ;;  %s236_s15 = smov [#allocation2]   ;;  %s24_s14 = int_to_ptr.hbm [resolvable:$true] %s23_s14 }
   0x4   :  { %s25_s16 = sshll.u32 %s236_s15, 4  ;;  %s42_s19 = sshll.u32 %s275_s1, 4  ;;  %s26_s16 = int_to_ptr.vmem [resolvable:$true] %s25_s16  ;;  %s43_s19 = int_to_ptr.hbm [resolvable:$true] %s42_s19 }
   0x5   :  { %s237_s20 = smov 128   ;;  %s238_s21 = smov 8  }
   0x6   :  { %31 = dma.hbm_to_vmem [thread:$0]  %s24_s14, 256, %s26_s16, [#allocation3], %s237_s20, %s237_s20, %s238_s21  }
   0x7   :  { %s239_s22 = smov [#allocation5]  }
   0x8   :  { %s44_s23 = sshll.u32 %s239_s22, 4  ;;  %s45_s23 = int_to_ptr.vmem [resolvable:$true] %s44_s23 }
   0x9   :  { %50 = dma.hbm_to_vmem [thread:$0]  %s43_s19, 256, %s45_s23, [#allocation6], %s237_s20, %s237_s20, %s238_s21  }
   0xa   :  { %228 = dma.done.wait [#allocation3], 256  }
   0xb   :  { %229 = vsyncadd [#allocation3], 4294967040 }
   0xc   :  { %230 = dma.done.wait [#allocation6], 256  }
   0xd   :  { %231 = vsyncadd [#allocation6], 4294967040  ;;  %v73_v0 = vld [vmem:[#allocation2] sm:$0xff]  ;;  %v74_v1 = vld [vmem:[#allocation2 + $0x8] sm:$0xff]  ;;  %s240_s0 = smov [#allocation8]   ;;  %s105_s1 = sshll.u32 %s277_s3, 4  ;;  %s106_s1 = int_to_ptr.hbm [resolvable:$true] %s105_s1 }
   0xe   :  { %v75_v2 = vld [vmem:[#allocation5] sm:$0xff]  ;;  %s103_s24 = sshll.u32 %s240_s0, 4  ;;  %v76_v3 = vld [vmem:[#allocation5 + $0x8] sm:$0xff]  ;;  %v84_v5 = vadd.f32 %v74_v1, %v73_v0  ;;  %s241_s27 = smov [#allocation7]   ;;  %s104_s24 = int_to_ptr.vmem [resolvable:$true] %s103_s24 }
   0xf   :  { %v77_v4 = vmul.f32 %v75_v2, %v73_v0  ;;  %v78_v6 = vmul.f32 %v76_v3, %v74_v1  ;;  %s92_s28 = sshll.u32 %s241_s27, 4  ;;  %s94_s4 = sshll.u32 %s276_s2, 4  ;;  %s93_s28 = int_to_ptr.vmem [resolvable:$true] %s92_s28  ;;  %s95_s4 = int_to_ptr.hbm [resolvable:$true] %s94_s4 }
  0x10   :  { %86 = vst [vmem:[#allocation8] sm:$0xff] %v84_v5 }
  0x11   :  { %v80_v7 = vadd.f32 %v78_v6, %v77_v4  ;;  %108 = dma.vmem_to_hbm [thread:$0]  %s104_s24, 128, %s106_s1, [#allocation9]  }
  0x13   :  { %82 = vst [vmem:[#allocation7] sm:$0xff] %v80_v7 }
  0x14   :  { %97 = dma.vmem_to_hbm [thread:$0]  %s93_s28, 128, %s95_s4, [#allocation4]  }
  0x15   :  { %232 = dma.done.wait [#allocation4], 128  }
  0x16   :  { %233 = vsyncadd [#allocation4], 4294967168 }
  0x17   :  { %234 = dma.done.wait [#allocation9], 128  }
  0x18   :  { %235 = vsyncadd [#allocation9], 4294967168 }
  0x19   :  { %117 = vsyncpa [#allocation3], 1 }
  0x1a   :  { %118 = vsyncpa [#allocation6], 1 }
  0x1b   :  { %119 = vsyncpa [#allocation4], 1 }
  0x1c   :  { %120 = vsyncpa [#allocation9], 1 }

</bundles_post_ra>
